<compile_context>
chip_gen: v5e
topology: v5e:2x2
jax: 0.10.0
libtpu: 0.0.40
codegen_flags: <defaults>
</compile_context>

<pallas_src>
import jax
import jax.numpy as jnp
from jax.experimental import pallas as pl
from jax.experimental.pallas import tpu as pltpu

_GATE_C = 0.5493061443340549  # atanh(0.5):  1 - 2*tanh(out) > 0  <=>  out < atanh(0.5)


def eccm_kernel(x_ref, p_ref, m_ref, o_ref, acc_ref):
    """One (batch_tile, layer) grid step.

    x_ref:   (L, B_TILE) f32     channel LLRs, batch on lanes (resident per batch tile)
    p_ref:   (1, D*L, 5) f32     packed per-layer vectors, row index r = d*L + l:
                                 [:,0]=w_in  [:,1]=b_in  [:,2]=b_mix  [:,3]=w_out
                                 [:,4]=b_out (replicated)
    m_ref:   (1, D*L, D*L) bf16  kron(I_D, A_layer): block-diagonal sequence mixer
    o_ref:   (L, B_TILE) f32     tanh(5*out), written once at the last layer (lane-dense)
    acc_ref: (L, B_TILE) f32     running decoder state `out` (VMEM scratch accumulator)
    """
    layer = pl.program_id(1)
    n_layers = pl.num_programs(1)

    x = x_ref[...]                                   # (L, Bt)
    L, Bt = x.shape
    p = p_ref[0]                                     # (DL, 5)
    m = m_ref[0]                                     # (DL, DL) bf16
    DL = m.shape[0]
    D = DL // L

    w_in, b_in, b_mix, w_out = (p[:, c:c + 1] for c in range(4))   # (DL, 1) each
    b_out = p[0:1, 4:5]                                            # (1, 1)

    @pl.when(layer == 0)
    def _init():
        acc_ref[...] = jnp.zeros_like(acc_ref)

    out = acc_ref[...]                               # (L, Bt)

    # xi = x * sign(1 - 2*tanh(out)); tanh monotone -> compare vs atanh(0.5).
    # (Measure-zero difference vs torch.sign at exact equality, see header.)
    xi = jnp.where(out < _GATE_C, x, -x)             # (L, Bt)

    # ---- stand-in sublayer (see TODO(synk) in header) -------------------------
    # Lift 1 -> D, stacked along sublanes: row index d*L + l.
    xi_rep = jnp.concatenate([xi] * D, axis=0)       # (DL, Bt), sublane-aligned chunks
    h = jnp.tanh(w_in * xi_rep + b_in)               # (DL, Bt) f32 (EUP)

    # Sequence mixing for all D channels at once: block-diagonal kron(I_D, A)
    # -> one bf16 MXU pass with full 128-deep contraction, f32 accumulation.
    mixed = jnp.dot(m, h.astype(jnp.bfloat16),
                    preferred_element_type=jnp.float32)            # (DL, Bt)
    h = jnp.tanh(mixed + b_mix)                      # (DL, Bt)

    # Project D -> 1: VPU multiply + sum of the D sublane-aligned blocks.
    w = w_out * h                                    # (DL, Bt)
    red = w[0:L, :]
    for d in range(1, D):
        red = red + w[d * L:(d + 1) * L, :]
    new_out = out + red + b_out                      # (L, Bt)

    acc_ref[...] = new_out

    @pl.when(layer == n_layers - 1)
    def _store():
        o_ref[...] = jnp.tanh(5.0 * new_out)         # single lane-dense store


def init_params(key, n_dec, L, D):
    """Deterministic xavier-uniform weights / zero biases (module-like, stacked over N_dec)."""
    k0, k1, k2 = jax.random.split(key, 3)

    def xavier(k, shape, fan_in, fan_out):
        a = (6.0 / (fan_in + fan_out)) ** 0.5
        return jax.random.uniform(k, shape, jnp.float32, -a, a)

    w_in = xavier(k0, (n_dec, D), 1, D)              # Linear(1 -> D).weight
    b_in = jnp.zeros((n_dec, D), jnp.float32)
    a_mix = xavier(k1, (n_dec, L, L), L, L)          # stand-in sequence-mixing matrix
    b_mix = jnp.zeros((n_dec, D), jnp.float32)
    w_out = xavier(k2, (n_dec, D), D, 1)             # Linear(D -> 1).weight
    b_out = jnp.zeros((n_dec,), jnp.float32)
    return (w_in, b_in, a_mix, b_mix, w_out, b_out)


def pack_params(params, L, mix_dtype=jnp.bfloat16):
    """One-time wrapper-side packing: 6 tiny arrays -> 2 kernel inputs."""
    w_in, b_in, a_mix, b_mix, w_out, b_out = params
    n_dec, D = w_in.shape
    DL = D * L

    def expand(v):                                   # (n_dec, D) -> (n_dec, D*L), row d*L+l = v[d]
        return jnp.repeat(v, L, axis=-1)

    p_packed = jnp.stack(
        [expand(w_in), expand(b_in), expand(b_mix), expand(w_out),
         jnp.broadcast_to(b_out[:, None], (n_dec, DL))],
        axis=-1).astype(jnp.float32)                 # (n_dec, DL, 5)

    # kron(I_D, A): M[d*L+k, e*L+l] = I[d,e] * A[k,l]  (block-diagonal mixer)
    eye = jnp.eye(D, dtype=jnp.float32)
    m_kron = jnp.einsum('de,nkl->ndkel', eye, a_mix).reshape(n_dec, DL, DL)
    return p_packed, m_kron.astype(mix_dtype)


def eccm_forward(x, syndrome, packed, *, b_tile=None):
    """Matches ECCM.forward(x, syndrome) -> (B, L, 1)."""
    del syndrome                                     # unused by the reference forward as well
    p_packed, m_kron = packed
    B, L = x.shape
    n_dec, DL, _ = m_kron.shape
    assert L % 8 == 0, "L must be a multiple of 8 (sublane alignment)"
    assert DL % L == 0

    if b_tile is None:
        b_tile = 128 if B % 128 == 0 else B          # lane-dense tiles when possible
    assert B % b_tile == 0
    nb = B // b_tile

    x_t = x.T                                        # (L, B): batch on lanes (layout plumbing)

    flops = 2 * n_dec * DL * DL * B                  # mixing matmuls
    transcendentals = 2 * n_dec * DL * B + L * B     # per-layer tanh + final tanh
    bytes_accessed = 2 * 4 * x.size + 2 * m_kron.size + 4 * p_packed.size

    out_t = pl.pallas_call(
        eccm_kernel,
        out_shape=jax.ShapeDtypeStruct((L, B), jnp.float32),
        grid_spec=pltpu.PrefetchScalarGridSpec(
            num_scalar_prefetch=0,
            grid=(nb, n_dec),                        # batch tiles (parallel) x layers (arbitrary)
            in_specs=[
                pl.BlockSpec((L, b_tile), lambda i, l: (0, i)),     # x^T, resident per tile
                pl.BlockSpec((1, DL, 5), lambda i, l: (l, 0, 0)),   # packed layer vectors
                pl.BlockSpec((1, DL, DL), lambda i, l: (l, 0, 0)),  # kron(I_D, A_layer), streamed
            ],
            out_specs=pl.BlockSpec((L, b_tile), lambda i, l: (0, i)),
            scratch_shapes=[pltpu.VMEM((L, b_tile), jnp.float32)],  # running `out`
        ),
        compiler_params=pltpu.CompilerParams(
            dimension_semantics=("parallel", "arbitrary"),
            vmem_limit_bytes=32 * 1024 * 1024,
        ),
        cost_estimate=pl.CostEstimate(
            flops=flops, transcendentals=transcendentals, bytes_accessed=bytes_accessed),
    )(x_t, p_packed, m_kron)

    return out_t.T[..., None]                        # (B, L, 1), like the PyTorch module


def eccm_reference(x, params):
    """Pure-JAX reference mirroring the PyTorch forward (with the same stand-in
    sublayer and the same bf16-operand / f32-accumulation mixing matmul)."""
    w_in, b_in, a_mix, b_mix, w_out, b_out = params
    n_dec, _ = w_in.shape
    xB = x[..., None]                                # (B, L, 1)
    out = jnp.zeros_like(xB)
    for l in range(n_dec):
        # bin_to_sign(z) = 1 - 2 z  (PyTorch semantics, incl. sign(0)=0).
        xi = xB * jnp.sign(1.0 - 2.0 * jnp.tanh(out))                    # (B, L, 1)
        h = jnp.tanh(xi * w_in[l] + b_in[l])                             # (B, L, D)
        mixed = jnp.einsum('ks,bsd->bkd',
                           a_mix[l].astype(jnp.bfloat16),
                           h.astype(jnp.bfloat16),
                           preferred_element_type=jnp.float32)           # (B, L, D)
        h = jnp.tanh(mixed + b_mix[l])
        diff = jnp.sum(h * w_out[l], axis=-1, keepdims=True) + b_out[l]  # (B, L, 1)
        out = out + diff
    return jnp.tanh(5.0 * out)


if __name__ == "__main__":
    key = jax.random.PRNGKey(0)
    # n = L = 16, d_model = P = 8, N_dec = 2.  B = 256 -> two lane-dense 128-wide
    # batch tiles (exercises the "parallel" grid axis) while staying tiny (16 KiB).
    B, L, P, N_DEC = 256, 16, 8, 2
    kx, ks, kp = jax.random.split(key, 3)

    x = jax.random.normal(kx, (B, L), jnp.float32)                        # channel LLRs
    syndrome = jax.random.bernoulli(ks, 0.5, (B, P)).astype(jnp.float32)  # unused by forward
    params = init_params(kp, N_DEC, L, P)
    packed = pack_params(params, L)

    out = jax.jit(eccm_forward)(x, syndrome, packed)
    jax.block_until_ready(out)

    assert out.shape == (B, L, 1)
    ref = eccm_reference(x, params)
    # Both paths use bf16 MXU operands with f32 accumulation; the loosened tolerance
    # covers bf16 rounding / transcendental-implementation differences between the
    # Mosaic and XLA lowerings (per review: re-validate accuracy when using bf16).
    assert jnp.allclose(out, ref, atol=2e-2, rtol=2e-2), "mismatch vs reference"
    print("KERNEL_OK")
</pallas_src>

<mosaic_0001>
module attributes {stable_mosaic.version = 11 : i64} {
  func.func @eccm_kernel(%arg0: i32, %arg1: i32, %arg2: memref<16x128xf32, #tpu.memory_space<vmem>>, %arg3: memref<1x128x5xf32, #tpu.memory_space<vmem>>, %arg4: memref<1x128x128xbf16, #tpu.memory_space<vmem>>, %arg5: memref<16x128xf32, #tpu.memory_space<vmem>>, %arg6: memref<16x128xf32, #tpu.memory_space<vmem>>) attributes {dimension_semantics = [#tpu.dimension_semantics<parallel>, #tpu.dimension_semantics<arbitrary>], iteration_bounds = array<i64: 2, 2>, scalar_prefetch = 0 : i64, scratch_operands = 1 : i64, tpu.core_type = #tpu.core_type<tc>, window_params = [{transform_indices = @transform_0, window_bounds = array<i64: 16, 128>}, {transform_indices = @transform_1, window_bounds = array<i64: 1, 128, 5>}, {transform_indices = @transform_2, window_bounds = array<i64: 1, 128, 128>}, {transform_indices = @transform_3, window_bounds = array<i64: 16, 128>}]} {
    %c0 = arith.constant 0 : index
    %c0_0 = arith.constant 0 : index
    %0 = vector.load %arg2[%c0, %c0_0] : memref<16x128xf32, #tpu.memory_space<vmem>>, vector<16x128xf32>
    %c0_1 = arith.constant 0 : index
    %c0_2 = arith.constant 0 : index
    %c0_3 = arith.constant 0 : index
    %1 = vector.load %arg3[%c0_1, %c0_2, %c0_3] : memref<1x128x5xf32, #tpu.memory_space<vmem>>, vector<1x128x5xf32>
    %2 = vector.shape_cast %1 : vector<1x128x5xf32> to vector<128x5xf32>
    %c0_4 = arith.constant 0 : index
    %c0_5 = arith.constant 0 : index
    %c0_6 = arith.constant 0 : index
    %3 = vector.load %arg4[%c0_4, %c0_5, %c0_6] : memref<1x128x128xbf16, #tpu.memory_space<vmem>>, vector<1x128x128xbf16>
    %4 = vector.shape_cast %3 : vector<1x128x128xbf16> to vector<128x128xbf16>
    %5 = vector.extract_strided_slice %2 {offsets = [0, 0], sizes = [128, 1], strides = [1, 1]} : vector<128x5xf32> to vector<128x1xf32>
    %6 = vector.extract_strided_slice %2 {offsets = [0, 1], sizes = [128, 1], strides = [1, 1]} : vector<128x5xf32> to vector<128x1xf32>
    %7 = vector.extract_strided_slice %2 {offsets = [0, 2], sizes = [128, 1], strides = [1, 1]} : vector<128x5xf32> to vector<128x1xf32>
    %8 = vector.extract_strided_slice %2 {offsets = [0, 3], sizes = [128, 1], strides = [1, 1]} : vector<128x5xf32> to vector<128x1xf32>
    %9 = vector.extract_strided_slice %2 {offsets = [0, 4], sizes = [1, 1], strides = [1, 1]} : vector<128x5xf32> to vector<1x1xf32>
    %c0_i32 = arith.constant 0 : i32
    %10 = arith.cmpi eq, %arg1, %c0_i32 : i32
    %11 = arith.extui %10 : i1 to i32
    %c0_i32_7 = arith.constant 0 : i32
    %12 = arith.cmpi ne, %11, %c0_i32_7 : i32
    scf.if %12 {
      %cst_15 = arith.constant 0.000000e+00 : f32
      %54 = vector.broadcast %cst_15 : f32 to vector<16x128xf32>
      %c0_16 = arith.constant 0 : index
      %c0_17 = arith.constant 0 : index
      %55 = vector.load %arg6[%c0_16, %c0_17] : memref<16x128xf32, #tpu.memory_space<vmem>>, vector<16x128xf32>
      tpu.vector_store %arg6[%c0_16, %c0_17], %54 {strides = array<i32>} : memref<16x128xf32, #tpu.memory_space<vmem>>, vector<16x128xf32>,
    } else {
    }
    %c0_8 = arith.constant 0 : index
    %c0_9 = arith.constant 0 : index
    %13 = vector.load %arg6[%c0_8, %c0_9] : memref<16x128xf32, #tpu.memory_space<vmem>>, vector<16x128xf32>
    %cst = arith.constant 0.549306154 : f32
    %14 = vector.broadcast %cst : f32 to vector<16x128xf32>
    %15 = arith.cmpf olt, %13, %14 : vector<16x128xf32>
    %cst_10 = arith.constant 0.000000e+00 : f32
    %16 = vector.broadcast %cst_10 : f32 to vector<16x128xf32>
    %17 = arith.subf %16, %0 : vector<16x128xf32>
    %18 = arith.select %15, %0, %17 : vector<16x128xi1>, vector<16x128xf32>
    %19 = tpu.concatenate %18, %18, %18, %18, %18, %18, %18, %18 in 0 : vector<16x128xf32>, vector<16x128xf32>, vector<16x128xf32>, vector<16x128xf32>, vector<16x128xf32>, vector<16x128xf32>, vector<16x128xf32>, vector<16x128xf32> -> vector<128x128xf32>
    %20 = vector.broadcast %5 : vector<128x1xf32> to vector<128x128xf32>
    %21 = arith.mulf %20, %19 : vector<128x128xf32>
    %22 = vector.broadcast %6 : vector<128x1xf32> to vector<128x128xf32>
    %23 = arith.addf %21, %22 : vector<128x128xf32>
    %24 = math.tanh %23 : vector<128x128xf32>
    %25 = arith.truncf %24 : vector<128x128xf32> to vector<128x128xbf16>
    %cst_11 = arith.constant dense<0.000000e+00> : vector<128x128xf32>
    %26 = tpu.matmul %4, %25, %cst_11 {dimension_numbers = #tpu.dot_dimension_numbers<[1], [0], [0], [1], [0, 0, 1, 1], [], []>} : vector<128x128xbf16>, vector<128x128xbf16>, vector<128x128xf32> -> vector<128x128xf32>
    %27 = vector.broadcast %7 : vector<128x1xf32> to vector<128x128xf32>
    %28 = arith.addf %26, %27 : vector<128x128xf32>
    %29 = math.tanh %28 : vector<128x128xf32>
    %30 = vector.broadcast %8 : vector<128x1xf32> to vector<128x128xf32>
    %31 = arith.mulf %30, %29 : vector<128x128xf32>
    %32 = vector.extract_strided_slice %31 {offsets = [0, 0], sizes = [16, 128], strides = [1, 1]} : vector<128x128xf32> to vector<16x128xf32>
    %33 = vector.extract_strided_slice %31 {offsets = [16, 0], sizes = [16, 128], strides = [1, 1]} : vector<128x128xf32> to vector<16x128xf32>
    %34 = arith.addf %32, %33 : vector<16x128xf32>
    %35 = vector.extract_strided_slice %31 {offsets = [32, 0], sizes = [16, 128], strides = [1, 1]} : vector<128x128xf32> to vector<16x128xf32>
    %36 = arith.addf %34, %35 : vector<16x128xf32>
    %37 = vector.extract_strided_slice %31 {offsets = [48, 0], sizes = [16, 128], strides = [1, 1]} : vector<128x128xf32> to vector<16x128xf32>
    %38 = arith.addf %36, %37 : vector<16x128xf32>
    %39 = vector.extract_strided_slice %31 {offsets = [64, 0], sizes = [16, 128], strides = [1, 1]} : vector<128x128xf32> to vector<16x128xf32>
    %40 = arith.addf %38, %39 : vector<16x128xf32>
    %41 = vector.extract_strided_slice %31 {offsets = [80, 0], sizes = [16, 128], strides = [1, 1]} : vector<128x128xf32> to vector<16x128xf32>
    %42 = arith.addf %40, %41 : vector<16x128xf32>
    %43 = vector.extract_strided_slice %31 {offsets = [96, 0], sizes = [16, 128], strides = [1, 1]} : vector<128x128xf32> to vector<16x128xf32>
    %44 = arith.addf %42, %43 : vector<16x128xf32>
    %45 = vector.extract_strided_slice %31 {offsets = [112, 0], sizes = [16, 128], strides = [1, 1]} : vector<128x128xf32> to vector<16x128xf32>
    %46 = arith.addf %44, %45 : vector<16x128xf32>
    %47 = arith.addf %13, %46 : vector<16x128xf32>
    %48 = vector.broadcast %9 : vector<1x1xf32> to vector<16x128xf32>
    %49 = arith.addf %47, %48 : vector<16x128xf32>
    %c0_12 = arith.constant 0 : index
    %c0_13 = arith.constant 0 : index
    %50 = vector.load %arg6[%c0_12, %c0_13] : memref<16x128xf32, #tpu.memory_space<vmem>>, vector<16x128xf32>
    tpu.vector_store %arg6[%c0_12, %c0_13], %49 {strides = array<i32>} : memref<16x128xf32, #tpu.memory_space<vmem>>, vector<16x128xf32>,
    %c1_i32 = arith.constant 1 : i32
    %51 = arith.cmpi eq, %arg1, %c1_i32 : i32
    %52 = arith.extui %51 : i1 to i32
    %c0_i32_14 = arith.constant 0 : i32
    %53 = arith.cmpi ne, %52, %c0_i32_14 : i32
    scf.if %53 {
      %cst_15 = arith.constant 5.000000e+00 : f32
      %54 = vector.broadcast %cst_15 : f32 to vector<16x128xf32>
      %55 = arith.mulf %54, %49 : vector<16x128xf32>
      %56 = math.tanh %55 : vector<16x128xf32>
      %c0_16 = arith.constant 0 : index
      %c0_17 = arith.constant 0 : index
      %57 = vector.load %arg5[%c0_16, %c0_17] : memref<16x128xf32, #tpu.memory_space<vmem>>, vector<16x128xf32>
      tpu.vector_store %arg5[%c0_16, %c0_17], %56 {strides = array<i32>} : memref<16x128xf32, #tpu.memory_space<vmem>>, vector<16x128xf32>,
    } else {
    }
    return
  }
  func.func @transform_0(%arg0: i32, %arg1: i32) -> (i32, i32) {
    %c0_i32 = arith.constant 0 : i32
    %c0_i32_0 = arith.constant 0 : i32
    return %c0_i32, %arg0 : i32, i32
  }
  func.func @transform_1(%arg0: i32, %arg1: i32) -> (i32, i32, i32) {
    %c0_i32 = arith.constant 0 : i32
    %c0_i32_0 = arith.constant 0 : i32
    %c0_i32_1 = arith.constant 0 : i32
    return %arg1, %c0_i32, %c0_i32_0 : i32, i32, i32
  }
  func.func @transform_2(%arg0: i32, %arg1: i32) -> (i32, i32, i32) {
    %c0_i32 = arith.constant 0 : i32
    %c0_i32_0 = arith.constant 0 : i32
    %c0_i32_1 = arith.constant 0 : i32
    return %arg1, %c0_i32, %c0_i32_0 : i32, i32, i32
  }
  func.func @transform_3(%arg0: i32, %arg1: i32) -> (i32, i32) {
    %c0_i32 = arith.constant 0 : i32
    %c0_i32_0 = arith.constant 0 : i32
    return %c0_i32, %arg0 : i32, i32
  }
}

</mosaic_0001>

<bundles_post_ra>
// kernel: eccm_forward.1
= control target key start
LH: loop header
LB: loop body
LE: loop exit
PB: predicated region body
PF: predicated region fallthrough
CT: control target
= control target key end

     0   :  { %s1245_s12 = smov 0   ;;  %s1247_s13 = smov 0   ;;  %s1607_s0 = inlined_call_operand.vmem [shape: f32[16,256], index: 0, kind: input, shape index: {}]   ;;  %s1608_s1 = inlined_call_operand.vmem [shape: f32[2,128,5], index: 1, kind: input, shape index: {}]   ;;  %s1609_s2 = inlined_call_operand.vmem [shape: bf16[2,128,128], index: 2, kind: input, shape index: {}]   ;;  %s1610_s3 = inlined_call_operand.vmem [shape: f32[16,256], index: 3, kind: output, shape index: {}]  }
   0x1   :  { %s1249_s14 = smov 0   ;;  %s1251_s15 = smov 0  }
   0x2   :  { %s1253_s16 = smov 0   ;;  %s1255_s17 = smov 0  }
   0x3   :  { %s1257_s18 = smov 0  }
   0x4 LB: > { %s22_s19 = sadd.s32 1, %s1209_s16  ;;  %s25_s20 = sadd.s32 1, %s1213_s17  ;;  %s1217_s18 = sphi %s1257_s18, %s13_s18   ;;  %s1213_s17 = sphi %s1255_s17, %s1623_s17   ;;  %s1209_s16 = sphi %s1253_s16, %s1622_s16   ;;  %s1205_s15 = sphi %s1251_s15, %s1621_s15   ;;  %s1201_s14 = sphi %s1249_s14, %s1620_s14   ;;  %s1197_s13 = sphi %s1247_s13, %s1619_s13   ;;  %s1193_s12 = sphi %s1245_s12, %s1618_s12  }
   0x5   : > { %p23_p0 = scmp.ge.s32.totalorder %s22_s19, 2  ;;  %s934_s21 = sadd.s32 4294967295, %s1217_s18  }
   0x6   : > { %p39_p1 = scmp.ne.s32.totalorder %s1197_s13, %s1193_s12  ;;  %p40_p2 = scmp.eq.s32.totalorder %s1217_s18, 0 }
   0x7   : > { %s1625_s19 = smov (%p23_p0, %s22_s19), 0  ;;  %s1627_s20 = smov (!%p23_p0, %s25_s20), %s1213_s17 }
   0x8   : > { %p121_p3 = scmp.eq.s32.totalorder %s934_s21, 3  ;;  %p27_p4 = scmp.ge.s32.totalorder %s1627_s20, 2 }
   0x9   : > { %p41_p5 = por %p40_p2, %p39_p1  ;;  %s32_s24 = sadd.s32 1, %s1197_s13 }
   0xa   : > { %p1289_p6 = por %p121_p3, %p39_p1  ;;  %s1629_s20 = smov (%p27_p4, %s1627_s20), 0 }
   0xb   : > { %s29_s23 = ssub.s32 %s1213_s17, %s1629_s20  ;;  %p937_p8 = scmp.ge.s32.totalorder %s1217_s18, 4 }
   0xc   : > { %p30_p7 = scmp.eq.s32.totalorder %s29_s23, 0 }
   0xd   : > { %143 = sbr.rel (%p937_p8) target bundleno = 24 (0x18), region = 16 }
   0xe   : > { %s1299_s25 = scalar_select %p30_p7, %s1197_s13, %s32_s24  }
  0x12   : > { %146 = sbr.rel (!%p41_p5) target bundleno = 24 (0x18), region = 20  ;;  %s148_s26 = sand.u32 (%p41_p5), 1, %s1197_s13  }
  0x13   : > { %s939_s27 = sshll.u32 (%p41_p5), %s1213_s17, 3  ;;  %s938_s28 = sshll.u32 (%p41_p5), %s148_s26, 4 }
  0x14   : > { %s152_s4 = scalar_lea.vmem (%p41_p5), %s1607_s0, %s939_s27  ;;  %s150_s5 = scalar_lea.vmem (%p41_p5), [#allocation3], %s938_s28 }
  0x15   : > { %v183_v0 = vld [vmem:[%s152_s4] sm:$0xff] (%p41_p5)  ;;  %v185_v1 = vld [vmem:[%s152_s4 + $0x10] sm:$0xff] (%p41_p5) }
  0x16   : > { %184 = vst [vmem:[%s150_s5] sm:$0xff] (%p41_p5), %v183_v0 }
  0x17   : > { %186 = vst [vmem:[%s150_s5 + $0x8] sm:$0xff] %v185_v1 }
  0x18 PF: > { %p940_p9 = scmp.ge.s32.totalorder %s1217_s18, 1  ;;  %p207_p10 = scmp.lt.s32.totalorder %s1217_s18, 5 }
  0x1a   : > { %p208_p11 = pnand %p940_p9, %p207_p10 }
  0x1c   : > { %211 = sbr.rel (%p208_p11) target bundleno = 482 (0x1e2), region = 66 }
  0x21   : > { %s214_s6 = sand.u32 1, %s1193_s12   ;;  %p246_p12 = scmp.lt.s32.totalorder %s1201_s14, 1 }
  0x22   : > { %s1311_s7 = sshll.u32 %s214_s6, 4  ;;  %p947_p13 = scmp.ne.s32.totalorder %s1201_s14, 0 }
  0x23   : > { %s247_s8 = scalar_select %p246_p12, %s1201_s14, 1 }
  0x24   : > { %s216_s9 = scalar_lea.vmem [#allocation3], %s1311_s7  ;;  %s1390_s28 = scalar_lea.vmem [#allocation4], %s1311_s7 }
  0x25   : > { %v1315_v2 = vld [vmem:[%s216_s9] sm:$0xff]  ;;  %v1317_v3 = vld [vmem:[%s216_s9 + $0x8] sm:$0xff]  ;;  %s985_s10 = sshll.u32 %s247_s8, 7  ;;  %s986_s24 = sshll.u32 %s247_s8, 6 }
  0x26   : > { %s250_s23 = scalar_lea.vmem %s1608_s1, %s985_s10  ;;  %s255_s27 = scalar_lea.vmem %s1609_s2, %s986_s24 }
  0x27   : > { %v1322_v4 = vld [vmem:[%s250_s23] sm:$0xff]  ;;  %v1324_v5 = vld [vmem:[%s250_s23 + $0x8] sm:$0xff]  ;;  %v1326_v6 = vld [vmem:[%s250_s23 + $0x10] sm:$0xff] }
  0x28   : > { %v1328_v7 = vld [vmem:[%s250_s23 + $0x18] sm:$0xff]  ;;  %v1330_v8 = vld [vmem:[%s250_s23 + $0x20] sm:$0xff]  ;;  %v1332_v9 = vld [vmem:[%s250_s23 + $0x28] sm:$0xff] }
  0x29   : > { %v1337_v10 = vld [vmem:[%s250_s23 + $0x30] sm:$0xff]  ;;  %v1339_v11 = vld [vmem:[%s250_s23 + $0x38] sm:$0xff]  ;;  %v1341_v12 = vld [vmem:[%s250_s23 + $0x40] sm:$0xff] }
  0x2a   : > { %v1343_v13 = vld [vmem:[%s250_s23 + $0x48] sm:$0xff]  ;;  %v1345_v14 = vld [vmem:[%s250_s23 + $0x50] sm:$0xff]  ;;  %v1347_v15 = vld [vmem:[%s250_s23 + $0x58] sm:$0xff] }
  0x2b   : > { %v1349_v16 = vld [vmem:[%s250_s23 + $0x60] sm:$0xff]  ;;  %v1351_v17 = vld [vmem:[%s250_s23 + $0x68] sm:$0xff]  ;;  %v1353_v18 = vld [vmem:[%s250_s23 + $0x70] sm:$0xff] }
  0x2c   : > { %v1355_v19 = vld [vmem:[%s250_s23 + $0x78] sm:$0xff]  ;;  %v1357_v20 = vld [vmem:[%s255_s27] sm:$0xf]  ;;  %v1359_v21 = vld [vmem:[%s255_s27] sm:$0xf0] }
  0x2d   : > { %v1361_v22 = vld [vmem:[%s255_s27 + $0x8] sm:$0xf]  ;;  %v1363_v23 = vld [vmem:[%s255_s27 + $0x8] sm:$0xf0]  ;;  %v1365_v24 = vld [vmem:[%s255_s27 + $0x10] sm:$0xf] }
  0x2e   : > { %v1367_v25 = vld [vmem:[%s255_s27 + $0x10] sm:$0xf0]  ;;  %v1369_v26 = vld [vmem:[%s255_s27 + $0x18] sm:$0xf]  ;;  %v1371_v27 = vld [vmem:[%s255_s27 + $0x18] sm:$0xf0] }
  0x2f   : > { %v1373_v28 = vld [vmem:[%s255_s27 + $0x20] sm:$0xf]  ;;  %v1375_v29 = vld [vmem:[%s255_s27 + $0x20] sm:$0xf0]  ;;  %v1377_v30 = vld [vmem:[%s255_s27 + $0x28] sm:$0xf] }
  0x30   : > { %v1379_v31 = vld [vmem:[%s255_s27 + $0x28] sm:$0xf0]  ;;  %v1381_v32 = vld [vmem:[%s255_s27 + $0x30] sm:$0xf]  ;;  %v1383_v33 = vld [vmem:[%s255_s27 + $0x30] sm:$0xf0] }
  0x31   : > { %v1385_v34 = vld [vmem:[%s255_s27 + $0x38] sm:$0xf]  ;;  %v1387_v35 = vld [vmem:[%s255_s27 + $0x38] sm:$0xf0]  ;;  %293 = sbr.rel (%p947_p13) target bundleno = 57 (0x39), region = 74 }
  0x36   : > { %v1219_v36 = vmov 0.0  }
  0x37   : > { %294 = vst [vmem:[#allocation2] sm:$0xff] %v1219_v36 }
  0x38   : > { %295 = vst [vmem:[#allocation2 + $0x8] sm:$0xff] %v1219_v36 }
  0x39 PF: > { %v1220_v37 = vmov 0   ;;  %v1221_v38 = vmov 1   ;;  %v1222_v42 = vmov 2   ;;  %v301_v58 = vsub.f32 0.0, %v1317_v3  ;;  %s1223_s29 = smov 124   ;;  %p980_p0 = scmp.ne.s32.totalorder %s1201_s14, 1 }
  0x3a   : > { %1085 = vset.pattern.permute.xlu2 %v1220_v37  ;;  %1084 = vset.pattern.permute.xlu1 %v1220_v37  ;;  %v300_v59 = vsub.f32 0.0, %v1315_v2 }
  0x3b   : > { %1083 = vset.pattern.permute.xlu0 %v1220_v37  ;;  %326 = vperm.xlu2 %1085, %v1330_v8  }
  0x3c   : > { %316 = vperm.xlu1 %1084, %v1326_v6   ;;  %306 = vperm.xlu0 %1083, %v1322_v4  }
  0x3e   : > { %v1458_v57 = vld [vmem:[#allocation2] sm:$0xff] }
  0x3f   : > { %v1455_v54 = vld [vmem:[#allocation2 + $0x8] sm:$0xff]  ;;  %1615 = vst [vmem:[#allocation6_spill] sm:$0xff] %v1458_v57  ;;  %vm298_vm1 = vcmp.lt.f32.partialorder %v1458_v57, 0.54930615 }
  0x40   : > { %1614 = vst [vmem:[#allocation5_spill] sm:$0xff] %v1455_v54  ;;  %vm299_vm0 = vcmp.lt.f32.partialorder %v1455_v54, 0.54930615  ;;  %v1470_v63 = vsel %vm298_vm1, %v1315_v2, %v300_v59 }
  0x41   : > { %v1465_v61 = vsel %vm299_vm0, %v1317_v3, %v301_v58 }
  0x43   : > { %331 = vperm.xlu2 %1085, %v1332_v9  }
  0x44   : > { %321 = vperm.xlu1 %1084, %v1328_v7   ;;  %311 = vperm.xlu0 %1083, %v1324_v5  }
  0x4b   : > { %346 = vperm.xlu2 %1085, %v1341_v12  }
  0x4c   : > { %341 = vperm.xlu1 %1084, %v1339_v11   ;;  %336 = vperm.xlu0 %1083, %v1337_v10  }
  0x53   : > { %361 = vperm.xlu2 %1085, %v1347_v15  }
  0x54   : > { %356 = vperm.xlu1 %1084, %v1345_v14   ;;  %351 = vperm.xlu0 %1083, %v1343_v13  }
  0x5b   : > { %376 = vperm.xlu2 %1085, %v1353_v18  }
  0x5c   : > { %371 = vperm.xlu1 %1084, %v1351_v17   ;;  %366 = vperm.xlu0 %1083, %v1349_v16  }
  0x63   : > { %1087 = vset.pattern.permute.xlu2 %v1221_v38 }
  0x64   : > { %1086 = vset.pattern.permute.xlu1 %v1221_v38  ;;  %381 = vperm.xlu0 %1083, %v1355_v19  }
  0x65   : > { %405 = vperm.xlu2 %1087, %v1324_v5   ;;  %401 = vperm.xlu1 %1086, %v1322_v4  }
  0x6c   : > { %1088 = vset.pattern.permute.xlu0 %v1221_v38 }
  0x6d   : > { %417 = vperm.xlu2 %1087, %v1330_v8   ;;  %413 = vperm.xlu1 %1086, %v1328_v7  }
  0x6e   : > { %409 = vperm.xlu0 %1088, %v1326_v6  }
  0x75   : > { %457 = vperm.xlu2 %1087, %v1353_v18   ;;  %421 = vperm.xlu1 %1086, %v1332_v9  }
  0x76   : > { %461 = vperm.xlu0 %1088, %v1355_v19  }
  0x7d   : > { %453 = vperm.xlu2 %1087, %v1351_v17   ;;  %449 = vperm.xlu1 %1086, %v1349_v16  }
  0x7e   : > { %441 = vperm.xlu0 %1088, %v1345_v14  }
  0x85   : > { %433 = vperm.xlu2 %1087, %v1341_v12   ;;  %445 = vperm.xlu1 %1086, %v1347_v15  }
  0x86   : > { %437 = vperm.xlu0 %1088, %v1343_v13  }
  0x8d   : > { %429 = vperm.xlu2 %1087, %v1339_v11   ;;  %425 = vperm.xlu1 %1086, %v1337_v10  }
  0x8e   : > { %1089 = vset.pattern.permute.xlu0 %v1222_v42 }
  0x8f   : > { %505 = vperm.xlu0 %1089, %v1322_v4  }
  0x95   : > { %v1425_v39 = vpop.permute.xlu2 %326  ;;  %1090 = vset.pattern.permute.xlu1 %v1222_v42  ;;  %1091 = vset.pattern.permute.xlu2 %v1222_v42 }
  0x96   : > { %509 = vperm.xlu1 %1090, %v1324_v5   ;;  %513 = vperm.xlu2 %1091, %v1326_v6  }
  0x97   : > { %525 = vperm.xlu0 %1089, %v1332_v9  }
  0x9d   : > { %v1427_v40 = vpop.permute.xlu2 %331 }
  0x9e   : > { %517 = vperm.xlu1 %1090, %v1328_v7   ;;  %521 = vperm.xlu2 %1091, %v1330_v8  }
  0x9f   : > { %537 = vperm.xlu0 %1089, %v1341_v12  }
  0xa5   : > { %v1429_v41 = vpop.permute.xlu2 %346 }
  0xa6   : > { %529 = vperm.xlu1 %1090, %v1337_v10   ;;  %533 = vperm.xlu2 %1091, %v1339_v11  }
  0xa7   : > { %549 = vperm.xlu0 %1089, %v1347_v15  }
  0xad   : > { %v1434_v45 = vpop.permute.xlu2 %361 }
  0xae   : > { %v317_v43 = vpop.permute.xlu1 %316  ;;  %v307_v44 = vpop.permute.xlu0 %306  ;;  %541 = vperm.xlu1 %1090, %v1343_v13   ;;  %545 = vperm.xlu2 %1091, %v1345_v14  }
  0xaf   : > { %561 = vperm.xlu0 %1089, %v1353_v18   ;;  %v384_v0 = vmul.f32 %v307_v44, %v1470_v63 }
  0xb5   : > { %v377_v48 = vpop.permute.xlu2 %376 }
  0xb6   : > { %v322_v46 = vpop.permute.xlu1 %321  ;;  %v312_v47 = vpop.permute.xlu0 %311  ;;  %553 = vperm.xlu1 %1090, %v1349_v16   ;;  %557 = vperm.xlu2 %1091, %v1351_v17  }
  0xb7   : > { %v385_v62 = vmul.f32 %v312_v47, %v1465_v61  ;;  %v387_v3 = vmul.f32 %v322_v46, %v1465_v61  ;;  %v386_v47 = vmul.f32 %v317_v43, %v1470_v63  ;;  %v389_v46 = vmul.f32 %v1427_v40, %v1465_v61 }
  0xbe   : > { %v1441_v49 = vpop.permute.xlu1 %341  ;;  %v1443_v50 = vpop.permute.xlu0 %336  ;;  %565 = vperm.xlu1 %1090, %v1355_v19  }
  0xbf   : > { %v406_v53 = vpop.permute.xlu2 %405 }
  0xc0   : > { %v465_v1 = vadd.f32 %v406_v53, %v385_v62  ;;  %v388_v62 = vmul.f32 %v1425_v39, %v1470_v63 }
  0xc2   : > { %1095 = vtanh.f32 %v465_v1 }
  0xc6   : > { %v1448_v51 = vpop.permute.xlu1 %356  ;;  %v1450_v52 = vpop.permute.xlu0 %351  ;;  %777 = vrot.lane.b32.xlu1 %v1322_v4, %s1223_s29 }
  0xc7   : > { %v418_v60 = vpop.permute.xlu2 %417 }
  0xc8   : > { %v1096_v54 = vpop.eup %1095  ;;  %v468_v1 = vadd.f32 %v418_v60, %v388_v62 }
  0xce   : > { %v372_v55 = vpop.permute.xlu1 %371  ;;  %v367_v56 = vpop.permute.xlu0 %366 }
  0xcf   : > { %v458_v42 = vpop.permute.xlu2 %457  ;;  %v397_v39 = vmul.f32 %v372_v55, %v1465_v61  ;;  %v396_v40 = vmul.f32 %v367_v56, %v1470_v63  ;;  %v394_v56 = vmul.f32 %v1448_v51, %v1470_v63  ;;  %v392_v51 = vmul.f32 %v1429_v41, %v1470_v63 }
  0xd6   : > { %v382_v36 = vpop.permute.xlu0 %381 }
  0xd7   : > { %v402_v37 = vpop.permute.xlu1 %401 }
  0xd8   : > { %v464_v38 = vadd.f32 %v402_v37, %v384_v0  ;;  %v398_v0 = vmul.f32 %v377_v48, %v1470_v63  ;;  %v454_v37 = vpop.permute.xlu2 %453 }
  0xd9   : > { %v477_v60 = vadd.f32 %v454_v37, %v397_v39 }
  0xda   : > { %1097 = vtanh.f32 %v464_v38  ;;  %v478_v43 = vadd.f32 %v458_v42, %v398_v0  ;;  %v399_v38 = vmul.f32 %v382_v36, %v1465_v61 }
  0xdf   : > { %v414_v58 = vpop.permute.xlu1 %413 }
  0xe0   : > { %v467_v2 = vadd.f32 %v414_v58, %v387_v3  ;;  %v410_v59 = vpop.permute.xlu0 %409  ;;  %v1098_v57 = vpop.eup %1097 }
  0xe1   : > { %v466_v44 = vadd.f32 %v410_v59, %v386_v47  ;;  %v1476_v53 = vpack.c.bf16 %v1096_v54, %v1098_v57 }
  0xe2   : > { %1099 = vtanh.f32 %v467_v2 }
  0xe3   : > { %1101 = vtanh.f32 %v466_v44  ;;  %v434_v44 = vpop.permute.xlu2 %433 }
  0xe4   : > { %1103 = vtanh.f32 %v468_v1  ;;  %v1224_v1 = vmov 3   ;;  %v472_v39 = vadd.f32 %v434_v44, %v392_v51 }
  0xe5   : > { %1105 = vtanh.f32 %v478_v43  ;;  %1094 = vset.pattern.permute.xlu1 %v1224_v1  ;;  %1093 = vset.pattern.permute.xlu0 %v1224_v1 }
  0xe6   : > { %694 = vperm.xlu1 %1094, %v1328_v7   ;;  %686 = vperm.xlu0 %1093, %v1324_v5   ;;  %v393_v7 = vmul.f32 %v1450_v52, %v1465_v61  ;;  %v390_v52 = vmul.f32 %v1443_v50, %v1470_v63 }
  0xe7   : > { %v422_v3 = vpop.permute.xlu1 %421  ;;  %1092 = vset.pattern.permute.xlu2 %v1224_v1 }
  0xe8   : > { %v469_v58 = vadd.f32 %v422_v3, %v389_v46  ;;  %v462_v47 = vpop.permute.xlu0 %461  ;;  %v1100_v54 = vpop.eup %1099  ;;  %682 = vperm.xlu2 %1092, %v1322_v4   ;;  %v395_v3 = vmul.f32 %v1434_v45, %v1465_v61  ;;  %v391_v45 = vmul.f32 %v1441_v49, %v1465_v61 }
  0xe9   : > { %v479_v57 = vadd.f32 %v462_v47, %v399_v38  ;;  %v1102_v59 = vpop.eup %1101 }
  0xea   : > { %1107 = vtanh.f32 %v469_v58  ;;  %v1485_v48 = vpack.c.bf16 %v1100_v54, %v1102_v59  ;;  %v1104_v42 = vpop.eup %1103 }
  0xeb   : > { %1109 = vtanh.f32 %v479_v57  ;;  %v1106_v36 = vpop.eup %1105 }
  0xec   : > { %1111 = vtanh.f32 %v477_v60  ;;  %v430_v60 = vpop.permute.xlu2 %429 }
  0xed   : > { %v471_v41 = vadd.f32 %v430_v60, %v391_v45 }
  0xee   : > { %706 = vperm.xlu1 %1094, %v1337_v10   ;;  %702 = vperm.xlu0 %1093, %v1332_v9  }
  0xef   : > { %v450_v2 = vpop.permute.xlu1 %449 }
  0xf0   : > { %v476_v62 = vadd.f32 %v450_v2, %v396_v40  ;;  %v442_v0 = vpop.permute.xlu0 %441  ;;  %v1108_v46 = vpop.eup %1107  ;;  %690 = vperm.xlu2 %1092, %v1326_v6  }
  0xf1   : > { %v1110_v43 = vpop.eup %1109  ;;  %v1488_v55 = vpack.c.bf16 %v1108_v46, %v1104_v42  ;;  %v474_v38 = vadd.f32 %v442_v0, %v394_v56 }
  0xf2   : > { %1113 = vtanh.f32 %v476_v62  ;;  %v503_v37 = vpack.c.bf16 %v1110_v43, %v1106_v36  ;;  %v1112_v58 = vpop.eup %1111 }
  0xf3   : > { %1115 = vtanh.f32 %v474_v38 }
  0xf4   : > { %616 = vmatpush.bf16.msra.mxu0 %v503_v37  ;;  %995 = vmatpush.bf16.msra.mxu1 %v503_v37 }
  0xf5   : > { %996 = vmatpush.bf16.msra.mxu2 %v503_v37  ;;  %997 = vmatpush.bf16.msra.mxu3 %v503_v37 }
  0xf6   : > { %718 = vperm.xlu1 %1094, %v1343_v13   ;;  %714 = vperm.xlu0 %1093, %v1341_v12   ;;  %v967_v12 = vor.u32 %v1375_v29, %v1373_v28  ;;  %v975_v13 = vor.u32 %v1383_v33, %v1381_v32 }
  0xf7   : > { %v446_v5 = vpop.permute.xlu1 %445 }
  0xf8   : > { %v1114_v47 = vpop.eup %1113  ;;  %v475_v54 = vadd.f32 %v446_v5, %v395_v3  ;;  %v438_v57 = vpop.permute.xlu0 %437  ;;  %698 = vperm.xlu2 %1092, %v1330_v8   ;;  %v951_v8 = vor.u32 %v1359_v21, %v1357_v20  ;;  %v979_v20 = vor.u32 %v1387_v35, %v1385_v34 }
  0xf9   : > { %v473_v4 = vadd.f32 %v438_v57, %v393_v7  ;;  %v502_v59 = vpack.c.bf16 %v1112_v58, %v1114_v47  ;;  %v1116_v40 = vpop.eup %1115 }
  0xfa   : > { %1117 = vtanh.f32 %v475_v54 }
  0xfb   : > { %617 = vmatpush.bf16.msra.mxu0 %v502_v59  ;;  %998 = vmatpush.bf16.msra.mxu1 %v502_v59  ;;  %1119 = vtanh.f32 %v473_v4 }
  0xfc   : > { %999 = vmatpush.bf16.msra.mxu2 %v502_v59  ;;  %1000 = vmatpush.bf16.msra.mxu3 %v502_v59  ;;  %1121 = vtanh.f32 %v472_v39 }
  0xfd   : > { %1123 = vtanh.f32 %v471_v41 }
  0xfe   : > { %730 = vperm.xlu1 %1094, %v1349_v16   ;;  %726 = vperm.xlu0 %1093, %v1347_v15   ;;  %v955_v15 = vor.u32 %v1363_v23, %v1361_v22  ;;  %v963_v16 = vor.u32 %v1371_v27, %v1369_v26 }
  0xff   : > { %v426_v42 = vpop.permute.xlu1 %425 }
 0x100   : > { %v1118_v10 = vpop.eup %1117  ;;  %v470_v2 = vadd.f32 %v426_v42, %v390_v52  ;;  %710 = vperm.xlu2 %1092, %v1339_v11   ;;  %v959_v11 = vor.u32 %v1367_v25, %v1365_v24  ;;  %v514_v25 = vpop.permute.xlu2 %513 }
 0x101   : > { %v501_v9 = vpack.c.bf16 %v1118_v10, %v1116_v40  ;;  %v1120_v36 = vpop.eup %1119  ;;  %v506_v26 = vpop.permute.xlu0 %505 }
 0x102   : > { %1125 = vtanh.f32 %v470_v2  ;;  %v1122_v49 = vpop.eup %1121 }
 0x103   : > { %618 = vmatpush.bf16.msra.mxu0 %v501_v9  ;;  %1001 = vmatpush.bf16.msra.mxu1 %v501_v9  ;;  %v500_v6 = vpack.c.bf16 %v1120_v36, %v1122_v49  ;;  %v1124_v50 = vpop.eup %1123 }
 0x104   : > { %1002 = vmatpush.bf16.msra.mxu2 %v501_v9  ;;  %1003 = vmatpush.bf16.msra.mxu3 %v501_v9 }
 0x106   : > { %742 = vperm.xlu1 %1094, %v1355_v19   ;;  %738 = vperm.xlu0 %1093, %v1353_v18   ;;  %v971_v19 = vor.u32 %v1379_v31, %v1377_v30 }
 0x107   : > { %619 = vmatpush.bf16.msra.mxu0 %v500_v6  ;;  %1004 = vmatpush.bf16.msra.mxu1 %v500_v6 }
 0x108   : > { %v1126_v61 = vpop.eup %1125  ;;  %1005 = vmatpush.bf16.msra.mxu2 %v500_v6  ;;  %1006 = vmatpush.bf16.msra.mxu3 %v500_v6  ;;  %v522_v27 = vpop.permute.xlu2 %521 }
 0x109   : > { %v499_v63 = vpack.c.bf16 %v1124_v50, %v1126_v61  ;;  %722 = vperm.xlu2 %1092, %v1345_v14   ;;  %v510_v14 = vpop.permute.xlu1 %509  ;;  %v526_v28 = vpop.permute.xlu0 %525 }
 0x10b   : > { %620 = vmatpush.bf16.msra.mxu0 %v499_v63  ;;  %1007 = vmatpush.bf16.msra.mxu1 %v499_v63 }
 0x10c   : > { %1008 = vmatpush.bf16.msra.mxu2 %v499_v63  ;;  %1009 = vmatpush.bf16.msra.mxu3 %v499_v63 }
 0x10f   : > { %621 = vmatpush.bf16.msra.mxu0 %v1488_v55  ;;  %1010 = vmatpush.bf16.msra.mxu1 %v1488_v55 }
 0x110   : > { %1011 = vmatpush.bf16.msra.mxu2 %v1488_v55  ;;  %1012 = vmatpush.bf16.msra.mxu3 %v1488_v55  ;;  %v534_v29 = vpop.permute.xlu2 %533 }
 0x111   : > { %734 = vperm.xlu2 %1092, %v1351_v17   ;;  %v1542_v18 = vpop.permute.xlu1 %517  ;;  %v538_v30 = vpop.permute.xlu0 %537 }
 0x113   : > { %622 = vmatpush.bf16.msra.mxu0 %v1485_v48  ;;  %1013 = vmatpush.bf16.msra.mxu1 %v1485_v48 }
 0x114   : > { %1014 = vmatpush.bf16.msra.mxu2 %v1485_v48  ;;  %1015 = vmatpush.bf16.msra.mxu3 %v1485_v48 }
 0x117   : > { %623 = vmatpush.bf16.msra.mxu0 %v1476_v53  ;;  %1016 = vmatpush.bf16.msra.mxu1 %v1476_v53 }
 0x118   : > { %1017 = vmatpush.bf16.msra.mxu2 %v1476_v53  ;;  %1018 = vmatpush.bf16.msra.mxu3 %v1476_v53  ;;  %v546_v31 = vpop.permute.xlu2 %545 }
 0x119   : > { %v530_v17 = vpop.permute.xlu1 %529  ;;  %v1552_v32 = vpop.permute.xlu0 %549 }
 0x11a   : > { %624 = vmatmul.bf16.vlgmr.msra.gmra.mxu0 %v951_v8  ;;  %634 = vmatmul.bf16.vlgmr.msra.gmra.mxu1 %v959_v11 }
 0x11b   : > { %644 = vmatmul.bf16.vlgmr.msra.gmra.mxu2 %v967_v12  ;;  %654 = vmatmul.bf16.vlgmr.msra.gmra.mxu3 %v975_v13 }
 0x120   : > { %v1554_v33 = vpop.permute.xlu2 %557 }
 0x121   : > { %v1548_v21 = vpop.permute.xlu1 %541  ;;  %v562_v34 = vpop.permute.xlu0 %561 }
 0x129   : > { %v554_v24 = vpop.permute.xlu1 %553 }
 0x12a   : > { %629 = vmatmul.bf16.gmra.mxu0 %v955_v15  ;;  %639 = vmatmul.bf16.gmra.mxu1 %v963_v16 }
 0x12b   : > { %649 = vmatmul.bf16.gmra.mxu2 %v971_v19  ;;  %659 = vmatmul.bf16.gmra.mxu3 %v979_v20 }
 0x131   : > { %v1550_v22 = vpop.permute.xlu1 %565 }
 0x139   : > { %v778_v23 = vpop.permute.xlu1 %777 }
 0x13a   : > { %1019 = vpush %v778_v23 }
 0x142   : > { %v683_v35 = vpop.permute.xlu2 %682 }
 0x14a   : > { %v691_v62 = vpop.permute.xlu2 %690 }
 0x152   : > { %v699_v37 = vpop.permute.xlu2 %698 }
 0x158   : > { %v1556_v53 = vpop.permute.xlu0 %686  ;;  %v1558_v0 = vpop.permute.xlu1 %694 }
 0x15a   : > { %v1562_v45 = vpop.permute.xlu2 %710 }
 0x160   : > { %v1560_v46 = vpop.permute.xlu0 %702  ;;  %v707_v38 = vpop.permute.xlu1 %706 }
 0x168   : > { %v715_v57 = vpop.permute.xlu0 %714  ;;  %v719_v61 = vpop.permute.xlu1 %718 }
 0x16b   : > { %s1020_s30 = spop %1019 }
 0x170   : > { %v727_v13 = vpop.permute.xlu0 %726 }
 0x197   : > { %v625_v48 = vpop.f32.mrf.mxu0  ;;  %v635_v44 = vpop.f32.mrf.mxu1 }
 0x198   : > { %v626_v3 = vadd.f32 %v625_v48, %v506_v26  ;;  %v636_v58 = vadd.f32 %v635_v44, %v522_v27 }
 0x19a   : > { %1127 = vtanh.f32 %v626_v3 }
 0x19b   : > { %1129 = vtanh.f32 %v636_v58  ;;  %v739_v58 = vpop.permute.xlu0 %738 }
 0x19e   : > { %v645_v1 = vpop.f32.mrf.mxu2  ;;  %v655_v43 = vpop.f32.mrf.mxu3 }
 0x19f   : > { %v627_v55 = vpop.f32.mrf.mxu0  ;;  %v637_v56 = vpop.f32.mrf.mxu1  ;;  %v646_v59 = vadd.f32 %v645_v1, %v538_v30  ;;  %v656_v39 = vadd.f32 %v655_v43, %v554_v24 }
 0x1a0   : > { %v628_v60 = vadd.f32 %v627_v55, %v510_v14  ;;  %v638_v41 = vadd.f32 %v637_v56, %v526_v28  ;;  %v1128_v42 = vpop.eup %1127  ;;  %v731_v56 = vpop.permute.xlu1 %730 }
 0x1a1   : > { %v1130_v36 = vpop.eup %1129  ;;  %v745_v8 = vmul.f32 %v1128_v42, %v683_v35 }
 0x1a2   : > { %v749_v16 = vmul.f32 %v1130_v36, %v699_v37 }
 0x1a6   : > { %v647_v7 = vpop.f32.mrf.mxu2  ;;  %v657_v5 = vpop.f32.mrf.mxu3 }
 0x1a7   : > { %v630_v47 = vpop.f32.mrf.mxu0  ;;  %v640_v51 = vpop.f32.mrf.mxu1  ;;  %v648_v14 = vadd.f32 %v647_v7, %v1548_v21  ;;  %v658_v27 = vadd.f32 %v657_v5, %v1554_v33 }
 0x1a8   : > { %v631_v54 = vadd.f32 %v630_v47, %v514_v25  ;;  %v641_v4 = vadd.f32 %v640_v51, %v530_v17 }
 0x1aa   : > { %1131 = vtanh.f32 %v631_v54 }
 0x1ab   : > { %1133 = vtanh.f32 %v641_v4  ;;  %v780_v4 = vstv %s1020_s30 }
 0x1ac   : > { %1135 = vtanh.f32 %v646_v59 }
 0x1ad   : > { %1137 = vtanh.f32 %v656_v39 }
 0x1ae   : > { %v650_v52 = vpop.f32.mrf.mxu2  ;;  %v660_v40 = vpop.f32.mrf.mxu3  ;;  %1139 = vtanh.f32 %v628_v60 }
 0x1af   : > { %v651_v10 = vadd.f32 %v650_v52, %v546_v31  ;;  %v632_v2 = vpop.f32.mrf.mxu0  ;;  %v642_v9 = vpop.f32.mrf.mxu1  ;;  %v661_v49 = vadd.f32 %v660_v40, %v562_v34 }
 0x1b0   : > { %v633_v6 = vadd.f32 %v632_v2, %v1542_v18  ;;  %v1132_v50 = vpop.eup %1131  ;;  %v643_v63 = vadd.f32 %v642_v9, %v534_v29  ;;  %v723_v34 = vpop.permute.xlu2 %722 }
 0x1b1   : > { %1141 = vtanh.f32 %v651_v10  ;;  %v747_v11 = vmul.f32 %v1132_v50, %v691_v62  ;;  %v1134_v12 = vpop.eup %1133 }
 0x1b2   : > { %1143 = vtanh.f32 %v638_v41  ;;  %v1136_v15 = vpop.eup %1135  ;;  %v751_v18 = vmul.f32 %v1134_v12, %v707_v38 }
 0x1b3   : > { %1145 = vtanh.f32 %v633_v6  ;;  %v761_v19 = vadd.f32 %v747_v11, %v745_v8  ;;  %v1138_v20 = vpop.eup %1137  ;;  %v753_v21 = vmul.f32 %v1136_v15, %v715_v57 }
 0x1b4   : > { %1147 = vtanh.f32 %v661_v49  ;;  %v1140_v17 = vpop.eup %1139  ;;  %v757_v33 = vmul.f32 %v1138_v20, %v731_v56  ;;  %v1617_v49 = vld [vmem:[#allocation5_spill] sm:$0xff] }
 0x1b5   : > { %1149 = vtanh.f32 %v643_v63  ;;  %v763_v24 = vadd.f32 %v761_v19, %v749_v16  ;;  %v746_v44 = vmul.f32 %v1140_v17, %v1556_v53 }
 0x1b6   : > { %v652_v23 = vpop.f32.mrf.mxu2  ;;  %v662_v25 = vpop.f32.mrf.mxu3  ;;  %1151 = vtanh.f32 %v648_v14 }
 0x1b7   : > { %v1142_v26 = vpop.eup %1141  ;;  %v653_v28 = vadd.f32 %v652_v23, %v1552_v32  ;;  %v765_v30 = vadd.f32 %v763_v24, %v751_v18  ;;  %v663_v35 = vadd.f32 %v662_v25, %v1550_v22 }
 0x1b8   : > { %v1144_v29 = vpop.eup %1143  ;;  %v755_v62 = vmul.f32 %v1142_v26, %v723_v34  ;;  %v735_v52 = vpop.permute.xlu2 %734 }
 0x1b9   : > { %v1146_v31 = vpop.eup %1145  ;;  %1153 = vtanh.f32 %v653_v28  ;;  %v767_v43 = vadd.f32 %v765_v30, %v753_v21  ;;  %v750_v32 = vmul.f32 %v1144_v29, %v1560_v46  ;;  %v1616_v46 = vld [vmem:[#allocation6_spill] sm:$0xff] }
 0x1ba   : > { %v1148_v48 = vpop.eup %1147  ;;  %v748_v1 = vmul.f32 %v1146_v31, %v1558_v0  ;;  %1155 = vtanh.f32 %v658_v27 }
 0x1bb   : > { %v1150_v55 = vpop.eup %1149  ;;  %v769_v38 = vadd.f32 %v767_v43, %v755_v62  ;;  %1157 = vtanh.f32 %v663_v35  ;;  %v759_v5 = vmul.f32 %v1148_v48, %v739_v58 }
 0x1bc   : > { %v762_v37 = vadd.f32 %v748_v1, %v746_v44  ;;  %v1152_v3 = vpop.eup %1151  ;;  %v752_v22 = vmul.f32 %v1150_v55, %v1562_v45  ;;  %v743_v45 = vpop.permute.xlu1 %742 }
 0x1bd   : > { %v771_v53 = vadd.f32 %v769_v38, %v757_v33  ;;  %v754_v0 = vmul.f32 %v1152_v3, %v719_v61 }
 0x1be   : > { %v764_v7 = vadd.f32 %v762_v37, %v750_v32 }
 0x1bf   : > { %v1154_v47 = vpop.eup %1153  ;;  %v773_v54 = vadd.f32 %v771_v53, %v759_v5 }
 0x1c0   : > { %v766_v51 = vadd.f32 %v764_v7, %v752_v22  ;;  %v1156_v57 = vpop.eup %1155  ;;  %v756_v59 = vmul.f32 %v1154_v47, %v727_v13 }
 0x1c1   : > { %v775_v60 = vadd.f32 %v773_v54, %v1616_v46  ;;  %v1158_v41 = vpop.eup %1157  ;;  %v758_v40 = vmul.f32 %v1156_v57, %v735_v52 }
 0x1c2   : > { %v768_v39 = vadd.f32 %v766_v51, %v754_v0  ;;  %v760_v2 = vmul.f32 %v1158_v41, %v743_v45 }
 0x1c3   : > { %v782_v10 = vadd.f32 %v780_v4, %v775_v60 }
 0x1c4   : > { %v770_v42 = vadd.f32 %v768_v39, %v756_v59 }
 0x1c5   : > { %784 = vst [vmem:[#allocation2] sm:$0xff] %v782_v10 }
 0x1c6   : > { %v772_v9 = vadd.f32 %v770_v42, %v758_v40 }
 0x1c8   : > { %v774_v36 = vadd.f32 %v772_v9, %v760_v2 }
 0x1ca   : > { %v776_v6 = vadd.f32 %v774_v36, %v1617_v49  ;;  %789 = sbr.rel (%p980_p0) target bundleno = 474 (0x1da), region = 78 }
 0x1cc   : > { %v783_v50 = vadd.f32 %v780_v4, %v776_v6 }
 0x1ce   : > { %785 = vst [vmem:[#allocation2 + $0x8] sm:$0xff] %v783_v50 }
 0x1cf   : > { %v790_v61 = vmul.f32 5.0, %v782_v10  ;;  %v791_v63 = vmul.f32 5.0, %v783_v50 }
 0x1d1   : > { %1159 = vtanh.f32 %v790_v61 }
 0x1d2   : > { %1161 = vtanh.f32 %v791_v63 }
 0x1d7   : > { %v1160_v8 = vpop.eup %1159 }
 0x1d8   : > { %v1162_v11 = vpop.eup %1161  ;;  %794 = vst [vmem:[%s1390_s28] sm:$0xff] %v1160_v8 }
 0x1d9   : > { %795 = vst [vmem:[%s1390_s28 + $0x8] sm:$0xff] %v1162_v11 }
 0x1da PF: > { %802 = sbr.rel (!%p1289_p6) target bundleno = 482 (0x1e2), region = 82  ;;  %s982_s4 = sshll.u32 (%p1289_p6), %s1205_s15, 3 }
 0x1db   : > { %s804_s6 = scalar_lea.vmem (%p1289_p6), %s1610_s3, %s982_s4 }
 0x1df   : > { %v835_v12 = vld [vmem:[%s1390_s28] sm:$0xff] }
 0x1e0   : > { %v837_v13 = vld [vmem:[%s1390_s28 + $0x8] sm:$0xff]  ;;  %836 = vst [vmem:[%s804_s6] sm:$0xff] %v835_v12 }
 0x1e1   : > { %838 = vst [vmem:[%s804_s6 + $0x10] sm:$0xff] %v837_v13 }
 0x1e2 PF: > { %s13_s18 = sadd.s32 1, %s1217_s18   ;;  %s1618_s12 = smov %s1197_s13 }
 0x1e3   : > { %p10_p1 = scmp.ge.s32.totalorder %s13_s18, 6   ;;  %s1619_s13 = smov %s1299_s25 }
 0x1e4   : > { %s1620_s14 = smov %s1209_s16  ;;  %s1621_s15 = smov %s1213_s17 }
 0x1e5   : > { %s1622_s16 = smov %s1625_s19  ;;  %s1623_s17 = smov %s1629_s20 }
 0x1e6   :  { %12 = sbr.rel (!%p10_p1) target bundleno = 4 (0x4), region = 157 }

</bundles_post_ra>
